<compile_context>
chip_gen: v7x
topology: tpu7x:2x2x1
jax: 0.10.0
libtpu: 0.0.40
codegen_flags: <defaults>
</compile_context>

<pallas_src>
import functools
import math

import jax
import jax.numpy as jnp
from jax.experimental import pallas as pl
from jax.experimental.pallas import tpu as pltpu


# ----------------------------------------------------------------------------
# Fused transformer-block kernel (one grid step == one batch element)
# ----------------------------------------------------------------------------
def _transformer_block_kernel(x_ref, ln1w_ref, ln1b_ref,
                              wqkv_ref, bqkv_ref, wo_ref, bo_ref,
                              ln2w_ref, ln2b_ref,
                              w1_ref, b1_ref, w2_ref, b2_ref,
                              o_ref, *, n_head):
    T, D = x_ref.shape
    hd = D // n_head
    scale = 1.0 / math.sqrt(hd)

    x = x_ref[...].astype(jnp.float32)                       # (T, D) residual stream

    # ---------------- LN1 ----------------
    mu = jnp.mean(x, axis=-1, keepdims=True)
    var = jnp.mean((x - mu) * (x - mu), axis=-1, keepdims=True)
    h = (x - mu) * jax.lax.rsqrt(var + 1e-5)                 # PyTorch LayerNorm eps
    h = h * ln1w_ref[...] + ln1b_ref[...]

    # ------------- fused QKV GEMM (lane-dense: N = 3*D) -------------
    qkv = jnp.dot(h, wqkv_ref[...],
                  preferred_element_type=jnp.float32) + bqkv_ref[...]   # (T, 3D)

    # ------------- causal self-attention, per head -------------
    row = jax.lax.broadcasted_iota(jnp.int32, (T, T), 0)
    col = jax.lax.broadcasted_iota(jnp.int32, (T, T), 1)
    causal = col <= row

    wo = wo_ref[...]                                         # (D, D)
    attn_out = jnp.zeros((T, D), jnp.float32)
    for hh in range(n_head):                                 # static unroll (n_head small)
        lo = hh * hd
        qh = qkv[:, lo:lo + hd]                              # (T, hd)
        kh = qkv[:, D + lo:D + lo + hd]
        vh = qkv[:, 2 * D + lo:2 * D + lo + hd]
        # scores = q @ k^T  (contract on head dim, no explicit transpose)
        att = jax.lax.dot_general(qh, kh, (((1,), (1,)), ((), ())),
                                  preferred_element_type=jnp.float32) * scale
        att = jnp.where(causal, att, -1e30)                  # causal mask
        att = att - jnp.max(att, axis=-1, keepdims=True)
        p = jnp.exp(att)
        p = p * pl.reciprocal(jnp.sum(p, axis=-1, keepdims=True), approx=True)
        yh = jnp.dot(p, vh, preferred_element_type=jnp.float32)      # (T, hd)
        # fold the out-projection per head: y @ Wo == sum_h y_h @ Wo[rows_h]
        attn_out = attn_out + jnp.dot(yh, wo[lo:lo + hd, :],
                                      preferred_element_type=jnp.float32)

    x = x + attn_out + bo_ref[...]                           # residual 1 (+ proj bias)

    # ---------------- LN2 + MLP ----------------
    mu = jnp.mean(x, axis=-1, keepdims=True)
    var = jnp.mean((x - mu) * (x - mu), axis=-1, keepdims=True)
    h2 = (x - mu) * jax.lax.rsqrt(var + 1e-5)
    h2 = h2 * ln2w_ref[...] + ln2b_ref[...]

    m = jnp.dot(h2, w1_ref[...], preferred_element_type=jnp.float32) + b1_ref[...]
    m = 0.5 * m * (1.0 + jax.lax.erf(m * (1.0 / math.sqrt(2.0))))   # exact GELU (nn.GELU)
    m = jnp.dot(m, w2_ref[...], preferred_element_type=jnp.float32) + b2_ref[...]

    o_ref[...] = (x + m).astype(o_ref.dtype)                 # residual 2


# ----------------------------------------------------------------------------
# Wrapper: one fused pallas_call for the whole block
# ----------------------------------------------------------------------------
def transformer_block_forward(x, p, n_head):
    """x: (B, T, D) f32.  p: dict of block parameters (weights as (in, out))."""
    B, T, D = x.shape
    H = mlp_hidden = p["w1"].shape[1]

    def row2(a):           # present 1-D params as (1, N) lane vectors
        return a.reshape(1, -1)

    weights = [
        row2(p["ln1_w"]), row2(p["ln1_b"]),
        p["wqkv"], row2(p["bqkv"]),
        p["wo"], row2(p["bo"]),
        row2(p["ln2_w"]), row2(p["ln2_b"]),
        p["w1"], row2(p["b1"]),
        p["w2"], row2(p["b2"]),
    ]

    x_spec = pl.BlockSpec((None, T, D), lambda b: (b, 0, 0))
    w_specs = [pl.BlockSpec(w.shape, lambda b: (0, 0)) for w in weights]

    return pl.pallas_call(
        functools.partial(_transformer_block_kernel, n_head=n_head),
        out_shape=jax.ShapeDtypeStruct((B, T, D), jnp.float32),
        grid=(B,),
        in_specs=[x_spec] + w_specs,
        out_specs=pl.BlockSpec((None, T, D), lambda b: (b, 0, 0)),
        compiler_params=pltpu.CompilerParams(
            dimension_semantics=("parallel",)),
    )(x, *weights)


# ----------------------------------------------------------------------------
# Plain-JAX reference (mirrors the PyTorch TransformerBlock, eval mode)
# ----------------------------------------------------------------------------
def _reference_block(x, p, n_head):
    B, T, D = x.shape
    hd = D // n_head

    def ln(z, w, b):
        mu = z.mean(-1, keepdims=True)
        var = ((z - mu) ** 2).mean(-1, keepdims=True)
        return (z - mu) / jnp.sqrt(var + 1e-5) * w + b

    h = ln(x, p["ln1_w"], p["ln1_b"])
    qkv = h @ p["wqkv"] + p["bqkv"]
    q, k, v = jnp.split(qkv, 3, axis=-1)
    q = q.reshape(B, T, n_head, hd).transpose(0, 2, 1, 3)
    k = k.reshape(B, T, n_head, hd).transpose(0, 2, 1, 3)
    v = v.reshape(B, T, n_head, hd).transpose(0, 2, 1, 3)
    att = jnp.einsum("bhqd,bhkd->bhqk", q, k) / math.sqrt(hd)
    mask = jnp.tril(jnp.ones((T, T), bool))
    att = jnp.where(mask[None, None], att, -jnp.inf)
    att = jax.nn.softmax(att, axis=-1)
    y = jnp.einsum("bhqk,bhkd->bhqd", att, v)
    y = y.transpose(0, 2, 1, 3).reshape(B, T, D) @ p["wo"] + p["bo"]
    x = x + y
    h2 = ln(x, p["ln2_w"], p["ln2_b"])
    m = h2 @ p["w1"] + p["b1"]
    m = 0.5 * m * (1.0 + jax.lax.erf(m / math.sqrt(2.0)))
    m = m @ p["w2"] + p["b2"]
    return x + m


# ----------------------------------------------------------------------------
# Deterministic parameter init (PyTorch Linear stored transposed: (in, out))
# ----------------------------------------------------------------------------
def init_block_params(key, d_model, n_head, mlp_ratio):
    ks = iter(jax.random.split(key, 16))

    def lin(fan_in, fan_out):
        w = jax.random.normal(next(ks), (fan_in, fan_out), jnp.float32) * 0.02
        return w, jnp.zeros((fan_out,), jnp.float32)

    (wq, bq), (wk, bk), (wv, bv) = (lin(d_model, d_model) for _ in range(3))
    wo, bo = lin(d_model, d_model)
    w1, b1 = lin(d_model, mlp_ratio * d_model)
    w2, b2 = lin(mlp_ratio * d_model, d_model)
    return dict(
        ln1_w=jnp.ones((d_model,), jnp.float32), ln1_b=jnp.zeros((d_model,), jnp.float32),
        ln2_w=jnp.ones((d_model,), jnp.float32), ln2_b=jnp.zeros((d_model,), jnp.float32),
        # fused QKV weight / bias: x @ Wqkv gives [q | k | v] along the lane axis
        wqkv=jnp.concatenate([wq, wk, wv], axis=1),
        bqkv=jnp.concatenate([bq, bk, bv], axis=0),
        wo=wo, bo=bo, w1=w1, b1=b1, w2=w2, b2=b2,
    )


# ----------------------------------------------------------------------------
if __name__ == "__main__":
    # Small shapes consistent with the module: B=2, T=block_size=8, d_model=64
    B, T, d_model, n_head, mlp_ratio = 2, 8, 64, 4, 4
    # attn_pdrop = resid_pdrop = 0 at eval -> dropout is identity.
    # TODO(synk): dropout layers are treated as identities (eval semantics).

    key = jax.random.PRNGKey(0)
    k_param, k_x = jax.random.split(key)
    params = init_block_params(k_param, d_model, n_head, mlp_ratio)
    x = jax.random.normal(k_x, (B, T, d_model), jnp.float32)

    y = transformer_block_forward(x, params, n_head)
    y = jax.block_until_ready(y)

    assert y.shape == (B, T, d_model)
    assert bool(jnp.all(jnp.isfinite(y)))

    # correctness check against a plain-JAX reference of the PyTorch block
    y_ref = _reference_block(x, params, n_head)
    err = float(jnp.max(jnp.abs(y - y_ref)))
    assert err < 1e-2, f"max abs error {err}"

    print("KERNEL_OK")
</pallas_src>

<mosaic_0001>
module attributes {stable_mosaic.version = 11 : i64} {
  func.func @_transformer_block_kernel(%arg0: i32, %arg1: memref<1x8x64xf32, #tpu.memory_space<vmem>>, %arg2: memref<1x64xf32, #tpu.memory_space<vmem>>, %arg3: memref<1x64xf32, #tpu.memory_space<vmem>>, %arg4: memref<64x192xf32, #tpu.memory_space<vmem>>, %arg5: memref<1x192xf32, #tpu.memory_space<vmem>>, %arg6: memref<64x64xf32, #tpu.memory_space<vmem>>, %arg7: memref<1x64xf32, #tpu.memory_space<vmem>>, %arg8: memref<1x64xf32, #tpu.memory_space<vmem>>, %arg9: memref<1x64xf32, #tpu.memory_space<vmem>>, %arg10: memref<64x256xf32, #tpu.memory_space<vmem>>, %arg11: memref<1x256xf32, #tpu.memory_space<vmem>>, %arg12: memref<256x64xf32, #tpu.memory_space<vmem>>, %arg13: memref<1x64xf32, #tpu.memory_space<vmem>>, %arg14: memref<1x8x64xf32, #tpu.memory_space<vmem>>) attributes {dimension_semantics = [#tpu.dimension_semantics<parallel>], iteration_bounds = array<i64: 2>, scalar_prefetch = 0 : i64, scratch_operands = 0 : i64, tpu.core_type = #tpu.core_type<tc>, window_params = [{transform_indices = @transform_0, window_bounds = array<i64: 1, 8, 64>}, {pipeline_mode = #tpu.pipeline_mode<synchronous>, transform_indices = @transform_1, window_bounds = array<i64: 1, 64>}, {pipeline_mode = #tpu.pipeline_mode<synchronous>, transform_indices = @transform_2, window_bounds = array<i64: 1, 64>}, {pipeline_mode = #tpu.pipeline_mode<synchronous>, transform_indices = @transform_3, window_bounds = array<i64: 64, 192>}, {pipeline_mode = #tpu.pipeline_mode<synchronous>, transform_indices = @transform_4, window_bounds = array<i64: 1, 192>}, {pipeline_mode = #tpu.pipeline_mode<synchronous>, transform_indices = @transform_5, window_bounds = array<i64: 64, 64>}, {pipeline_mode = #tpu.pipeline_mode<synchronous>, transform_indices = @transform_6, window_bounds = array<i64: 1, 64>}, {pipeline_mode = #tpu.pipeline_mode<synchronous>, transform_indices = @transform_7, window_bounds = array<i64: 1, 64>}, {pipeline_mode = #tpu.pipeline_mode<synchronous>, transform_indices = @transform_8, window_bounds = array<i64: 1, 64>}, {pipeline_mode = #tpu.pipeline_mode<synchronous>, transform_indices = @transform_9, window_bounds = array<i64: 64, 256>}, {pipeline_mode = #tpu.pipeline_mode<synchronous>, transform_indices = @transform_10, window_bounds = array<i64: 1, 256>}, {pipeline_mode = #tpu.pipeline_mode<synchronous>, transform_indices = @transform_11, window_bounds = array<i64: 256, 64>}, {pipeline_mode = #tpu.pipeline_mode<synchronous>, transform_indices = @transform_12, window_bounds = array<i64: 1, 64>}, {transform_indices = @transform_13, window_bounds = array<i64: 1, 8, 64>}]} {
    %c0 = arith.constant 0 : index
    %c0_0 = arith.constant 0 : index
    %c0_1 = arith.constant 0 : index
    %0 = vector.load %arg1[%c0, %c0_0, %c0_1] : memref<1x8x64xf32, #tpu.memory_space<vmem>>, vector<1x8x64xf32>
    %1 = vector.shape_cast %0 : vector<1x8x64xf32> to vector<8x64xf32>
    %cst = arith.constant dense<0.000000e+00> : vector<8xf32>
    %2 = vector.multi_reduction <add>, %1, %cst [1] : vector<8x64xf32> to vector<8xf32>
    %3 = vector.shape_cast %2 : vector<8xf32> to vector<8x1xf32>
    %cst_2 = arith.constant 6.400000e+01 : f32
    %4 = vector.broadcast %cst_2 : f32 to vector<8x1xf32>
    %5 = arith.divf %3, %4 : vector<8x1xf32>
    %6 = vector.broadcast %5 : vector<8x1xf32> to vector<8x64xf32>
    %7 = arith.subf %1, %6 : vector<8x64xf32>
    %8 = vector.broadcast %5 : vector<8x1xf32> to vector<8x64xf32>
    %9 = arith.subf %1, %8 : vector<8x64xf32>
    %10 = arith.mulf %7, %9 : vector<8x64xf32>
    %cst_3 = arith.constant dense<0.000000e+00> : vector<8xf32>
    %11 = vector.multi_reduction <add>, %10, %cst_3 [1] : vector<8x64xf32> to vector<8xf32>
    %12 = vector.shape_cast %11 : vector<8xf32> to vector<8x1xf32>
    %cst_4 = arith.constant 6.400000e+01 : f32
    %13 = vector.broadcast %cst_4 : f32 to vector<8x1xf32>
    %14 = arith.divf %12, %13 : vector<8x1xf32>
    %15 = vector.broadcast %5 : vector<8x1xf32> to vector<8x64xf32>
    %16 = arith.subf %1, %15 : vector<8x64xf32>
    %cst_5 = arith.constant 9.99999974E-6 : f32
    %17 = vector.broadcast %cst_5 : f32 to vector<8x1xf32>
    %18 = arith.addf %14, %17 : vector<8x1xf32>
    %19 = math.rsqrt %18 : vector<8x1xf32>
    %20 = vector.broadcast %19 : vector<8x1xf32> to vector<8x64xf32>
    %21 = arith.mulf %16, %20 : vector<8x64xf32>
    %c0_6 = arith.constant 0 : index
    %c0_7 = arith.constant 0 : index
    %22 = vector.load %arg2[%c0_6, %c0_7] : memref<1x64xf32, #tpu.memory_space<vmem>>, vector<1x64xf32>
    %23 = vector.broadcast %22 : vector<1x64xf32> to vector<8x64xf32>
    %24 = arith.mulf %21, %23 : vector<8x64xf32>
    %c0_8 = arith.constant 0 : index
    %c0_9 = arith.constant 0 : index
    %25 = vector.load %arg3[%c0_8, %c0_9] : memref<1x64xf32, #tpu.memory_space<vmem>>, vector<1x64xf32>
    %26 = vector.broadcast %25 : vector<1x64xf32> to vector<8x64xf32>
    %27 = arith.addf %24, %26 : vector<8x64xf32>
    %c0_10 = arith.constant 0 : index
    %c0_11 = arith.constant 0 : index
    %28 = vector.load %arg4[%c0_10, %c0_11] : memref<64x192xf32, #tpu.memory_space<vmem>>, vector<64x192xf32>
    %cst_12 = arith.constant dense<0.000000e+00> : vector<8x192xf32>
    %29 = tpu.matmul %27, %28, %cst_12 {dimension_numbers = #tpu.dot_dimension_numbers<[1], [0], [0], [1], [0, 0, 1, 1], [], []>} : vector<8x64xf32>, vector<64x192xf32>, vector<8x192xf32> -> vector<8x192xf32>
    %c0_13 = arith.constant 0 : index
    %c0_14 = arith.constant 0 : index
    %30 = vector.load %arg5[%c0_13, %c0_14] : memref<1x192xf32, #tpu.memory_space<vmem>>, vector<1x192xf32>
    %31 = vector.broadcast %30 : vector<1x192xf32> to vector<8x192xf32>
    %32 = arith.addf %29, %31 : vector<8x192xf32>
    %33 = tpu.iota {dimensions = array<i32: 0>} : vector<8x8xi32>
    %34 = tpu.iota {dimensions = array<i32: 1>} : vector<8x8xi32>
    %35 = arith.cmpi sle, %34, %33 : vector<8x8xi32>
    %c0_15 = arith.constant 0 : index
    %c0_16 = arith.constant 0 : index
    %36 = vector.load %arg6[%c0_15, %c0_16] : memref<64x64xf32, #tpu.memory_space<vmem>>, vector<64x64xf32>
    %cst_17 = arith.constant 0.000000e+00 : f32
    %37 = vector.broadcast %cst_17 : f32 to vector<8x64xf32>
    %38 = vector.extract_strided_slice %32 {offsets = [0, 0], sizes = [8, 16], strides = [1, 1]} : vector<8x192xf32> to vector<8x16xf32>
    %39 = vector.extract_strided_slice %32 {offsets = [0, 64], sizes = [8, 16], strides = [1, 1]} : vector<8x192xf32> to vector<8x16xf32>
    %40 = vector.extract_strided_slice %32 {offsets = [0, 128], sizes = [8, 16], strides = [1, 1]} : vector<8x192xf32> to vector<8x16xf32>
    %cst_18 = arith.constant dense<0.000000e+00> : vector<8x8xf32>
    %41 = tpu.matmul %38, %39, %cst_18 {dimension_numbers = #tpu.dot_dimension_numbers<[1], [1], [0], [0], [0, 0, 1, 0], [], []>} : vector<8x16xf32>, vector<8x16xf32>, vector<8x8xf32> -> vector<8x8xf32>
    %cst_19 = arith.constant 2.500000e-01 : f32
    %42 = vector.broadcast %cst_19 : f32 to vector<8x8xf32>
    %43 = arith.mulf %41, %42 : vector<8x8xf32>
    %cst_20 = arith.constant -1.000000e+30 : f32
    %44 = vector.broadcast %cst_20 : f32 to vector<8x8xf32>
    %45 = arith.select %35, %43, %44 : vector<8x8xi1>, vector<8x8xf32>
    %cst_21 = arith.constant dense<0xFF800000> : vector<8xf32>
    %46 = vector.multi_reduction <maximumf>, %45, %cst_21 [1] : vector<8x8xf32> to vector<8xf32>
    %47 = vector.shape_cast %46 : vector<8xf32> to vector<8x1xf32>
    %48 = vector.broadcast %47 : vector<8x1xf32> to vector<8x8xf32>
    %49 = arith.subf %45, %48 : vector<8x8xf32>
    %50 = math.exp %49 : vector<8x8xf32>
    %cst_22 = arith.constant dense<0.000000e+00> : vector<8xf32>
    %51 = vector.multi_reduction <add>, %50, %cst_22 [1] : vector<8x8xf32> to vector<8xf32>
    %52 = vector.shape_cast %51 : vector<8xf32> to vector<8x1xf32>
    %53 = tpu.reciprocal %52 {approx = true} : vector<8x1xf32> -> vector<8x1xf32>
    %54 = vector.broadcast %53 : vector<8x1xf32> to vector<8x8xf32>
    %55 = arith.mulf %50, %54 : vector<8x8xf32>
    %cst_23 = arith.constant dense<0.000000e+00> : vector<8x16xf32>
    %56 = tpu.matmul %55, %40, %cst_23 {dimension_numbers = #tpu.dot_dimension_numbers<[1], [0], [0], [1], [0, 0, 1, 1], [], []>} : vector<8x8xf32>, vector<8x16xf32>, vector<8x16xf32> -> vector<8x16xf32>
    %57 = vector.extract_strided_slice %36 {offsets = [0, 0], sizes = [16, 64], strides = [1, 1]} : vector<64x64xf32> to vector<16x64xf32>
    %cst_24 = arith.constant dense<0.000000e+00> : vector<8x64xf32>
    %58 = tpu.matmul %56, %57, %cst_24 {dimension_numbers = #tpu.dot_dimension_numbers<[1], [0], [0], [1], [0, 0, 1, 1], [], []>} : vector<8x16xf32>, vector<16x64xf32>, vector<8x64xf32> -> vector<8x64xf32>
    %59 = arith.addf %37, %58 : vector<8x64xf32>
    %60 = vector.extract_strided_slice %32 {offsets = [0, 16], sizes = [8, 16], strides = [1, 1]} : vector<8x192xf32> to vector<8x16xf32>
    %61 = vector.extract_strided_slice %32 {offsets = [0, 80], sizes = [8, 16], strides = [1, 1]} : vector<8x192xf32> to vector<8x16xf32>
    %62 = vector.extract_strided_slice %32 {offsets = [0, 144], sizes = [8, 16], strides = [1, 1]} : vector<8x192xf32> to vector<8x16xf32>
    %cst_25 = arith.constant dense<0.000000e+00> : vector<8x8xf32>
    %63 = tpu.matmul %60, %61, %cst_25 {dimension_numbers = #tpu.dot_dimension_numbers<[1], [1], [0], [0], [0, 0, 1, 0], [], []>} : vector<8x16xf32>, vector<8x16xf32>, vector<8x8xf32> -> vector<8x8xf32>
    %cst_26 = arith.constant 2.500000e-01 : f32
    %64 = vector.broadcast %cst_26 : f32 to vector<8x8xf32>
    %65 = arith.mulf %63, %64 : vector<8x8xf32>
    %cst_27 = arith.constant -1.000000e+30 : f32
    %66 = vector.broadcast %cst_27 : f32 to vector<8x8xf32>
    %67 = arith.select %35, %65, %66 : vector<8x8xi1>, vector<8x8xf32>
    %cst_28 = arith.constant dense<0xFF800000> : vector<8xf32>
    %68 = vector.multi_reduction <maximumf>, %67, %cst_28 [1] : vector<8x8xf32> to vector<8xf32>
    %69 = vector.shape_cast %68 : vector<8xf32> to vector<8x1xf32>
    %70 = vector.broadcast %69 : vector<8x1xf32> to vector<8x8xf32>
    %71 = arith.subf %67, %70 : vector<8x8xf32>
    %72 = math.exp %71 : vector<8x8xf32>
    %cst_29 = arith.constant dense<0.000000e+00> : vector<8xf32>
    %73 = vector.multi_reduction <add>, %72, %cst_29 [1] : vector<8x8xf32> to vector<8xf32>
    %74 = vector.shape_cast %73 : vector<8xf32> to vector<8x1xf32>
    %75 = tpu.reciprocal %74 {approx = true} : vector<8x1xf32> -> vector<8x1xf32>
    %76 = vector.broadcast %75 : vector<8x1xf32> to vector<8x8xf32>
    %77 = arith.mulf %72, %76 : vector<8x8xf32>
    %cst_30 = arith.constant dense<0.000000e+00> : vector<8x16xf32>
    %78 = tpu.matmul %77, %62, %cst_30 {dimension_numbers = #tpu.dot_dimension_numbers<[1], [0], [0], [1], [0, 0, 1, 1], [], []>} : vector<8x8xf32>, vector<8x16xf32>, vector<8x16xf32> -> vector<8x16xf32>
    %79 = vector.extract_strided_slice %36 {offsets = [16, 0], sizes = [16, 64], strides = [1, 1]} : vector<64x64xf32> to vector<16x64xf32>
    %cst_31 = arith.constant dense<0.000000e+00> : vector<8x64xf32>
    %80 = tpu.matmul %78, %79, %cst_31 {dimension_numbers = #tpu.dot_dimension_numbers<[1], [0], [0], [1], [0, 0, 1, 1], [], []>} : vector<8x16xf32>, vector<16x64xf32>, vector<8x64xf32> -> vector<8x64xf32>
    %81 = arith.addf %59, %80 : vector<8x64xf32>
    %82 = vector.extract_strided_slice %32 {offsets = [0, 32], sizes = [8, 16], strides = [1, 1]} : vector<8x192xf32> to vector<8x16xf32>
    %83 = vector.extract_strided_slice %32 {offsets = [0, 96], sizes = [8, 16], strides = [1, 1]} : vector<8x192xf32> to vector<8x16xf32>
    %84 = vector.extract_strided_slice %32 {offsets = [0, 160], sizes = [8, 16], strides = [1, 1]} : vector<8x192xf32> to vector<8x16xf32>
    %cst_32 = arith.constant dense<0.000000e+00> : vector<8x8xf32>
    %85 = tpu.matmul %82, %83, %cst_32 {dimension_numbers = #tpu.dot_dimension_numbers<[1], [1], [0], [0], [0, 0, 1, 0], [], []>} : vector<8x16xf32>, vector<8x16xf32>, vector<8x8xf32> -> vector<8x8xf32>
    %cst_33 = arith.constant 2.500000e-01 : f32
    %86 = vector.broadcast %cst_33 : f32 to vector<8x8xf32>
    %87 = arith.mulf %85, %86 : vector<8x8xf32>
    %cst_34 = arith.constant -1.000000e+30 : f32
    %88 = vector.broadcast %cst_34 : f32 to vector<8x8xf32>
    %89 = arith.select %35, %87, %88 : vector<8x8xi1>, vector<8x8xf32>
    %cst_35 = arith.constant dense<0xFF800000> : vector<8xf32>
    %90 = vector.multi_reduction <maximumf>, %89, %cst_35 [1] : vector<8x8xf32> to vector<8xf32>
    %91 = vector.shape_cast %90 : vector<8xf32> to vector<8x1xf32>
    %92 = vector.broadcast %91 : vector<8x1xf32> to vector<8x8xf32>
    %93 = arith.subf %89, %92 : vector<8x8xf32>
    %94 = math.exp %93 : vector<8x8xf32>
    %cst_36 = arith.constant dense<0.000000e+00> : vector<8xf32>
    %95 = vector.multi_reduction <add>, %94, %cst_36 [1] : vector<8x8xf32> to vector<8xf32>
    %96 = vector.shape_cast %95 : vector<8xf32> to vector<8x1xf32>
    %97 = tpu.reciprocal %96 {approx = true} : vector<8x1xf32> -> vector<8x1xf32>
    %98 = vector.broadcast %97 : vector<8x1xf32> to vector<8x8xf32>
    %99 = arith.mulf %94, %98 : vector<8x8xf32>
    %cst_37 = arith.constant dense<0.000000e+00> : vector<8x16xf32>
    %100 = tpu.matmul %99, %84, %cst_37 {dimension_numbers = #tpu.dot_dimension_numbers<[1], [0], [0], [1], [0, 0, 1, 1], [], []>} : vector<8x8xf32>, vector<8x16xf32>, vector<8x16xf32> -> vector<8x16xf32>
    %101 = vector.extract_strided_slice %36 {offsets = [32, 0], sizes = [16, 64], strides = [1, 1]} : vector<64x64xf32> to vector<16x64xf32>
    %cst_38 = arith.constant dense<0.000000e+00> : vector<8x64xf32>
    %102 = tpu.matmul %100, %101, %cst_38 {dimension_numbers = #tpu.dot_dimension_numbers<[1], [0], [0], [1], [0, 0, 1, 1], [], []>} : vector<8x16xf32>, vector<16x64xf32>, vector<8x64xf32> -> vector<8x64xf32>
    %103 = arith.addf %81, %102 : vector<8x64xf32>
    %104 = vector.extract_strided_slice %32 {offsets = [0, 48], sizes = [8, 16], strides = [1, 1]} : vector<8x192xf32> to vector<8x16xf32>
    %105 = vector.extract_strided_slice %32 {offsets = [0, 112], sizes = [8, 16], strides = [1, 1]} : vector<8x192xf32> to vector<8x16xf32>
    %106 = vector.extract_strided_slice %32 {offsets = [0, 176], sizes = [8, 16], strides = [1, 1]} : vector<8x192xf32> to vector<8x16xf32>
    %cst_39 = arith.constant dense<0.000000e+00> : vector<8x8xf32>
    %107 = tpu.matmul %104, %105, %cst_39 {dimension_numbers = #tpu.dot_dimension_numbers<[1], [1], [0], [0], [0, 0, 1, 0], [], []>} : vector<8x16xf32>, vector<8x16xf32>, vector<8x8xf32> -> vector<8x8xf32>
    %cst_40 = arith.constant 2.500000e-01 : f32
    %108 = vector.broadcast %cst_40 : f32 to vector<8x8xf32>
    %109 = arith.mulf %107, %108 : vector<8x8xf32>
    %cst_41 = arith.constant -1.000000e+30 : f32
    %110 = vector.broadcast %cst_41 : f32 to vector<8x8xf32>
    %111 = arith.select %35, %109, %110 : vector<8x8xi1>, vector<8x8xf32>
    %cst_42 = arith.constant dense<0xFF800000> : vector<8xf32>
    %112 = vector.multi_reduction <maximumf>, %111, %cst_42 [1] : vector<8x8xf32> to vector<8xf32>
    %113 = vector.shape_cast %112 : vector<8xf32> to vector<8x1xf32>
    %114 = vector.broadcast %113 : vector<8x1xf32> to vector<8x8xf32>
    %115 = arith.subf %111, %114 : vector<8x8xf32>
    %116 = math.exp %115 : vector<8x8xf32>
    %cst_43 = arith.constant dense<0.000000e+00> : vector<8xf32>
    %117 = vector.multi_reduction <add>, %116, %cst_43 [1] : vector<8x8xf32> to vector<8xf32>
    %118 = vector.shape_cast %117 : vector<8xf32> to vector<8x1xf32>
    %119 = tpu.reciprocal %118 {approx = true} : vector<8x1xf32> -> vector<8x1xf32>
    %120 = vector.broadcast %119 : vector<8x1xf32> to vector<8x8xf32>
    %121 = arith.mulf %116, %120 : vector<8x8xf32>
    %cst_44 = arith.constant dense<0.000000e+00> : vector<8x16xf32>
    %122 = tpu.matmul %121, %106, %cst_44 {dimension_numbers = #tpu.dot_dimension_numbers<[1], [0], [0], [1], [0, 0, 1, 1], [], []>} : vector<8x8xf32>, vector<8x16xf32>, vector<8x16xf32> -> vector<8x16xf32>
    %123 = vector.extract_strided_slice %36 {offsets = [48, 0], sizes = [16, 64], strides = [1, 1]} : vector<64x64xf32> to vector<16x64xf32>
    %cst_45 = arith.constant dense<0.000000e+00> : vector<8x64xf32>
    %124 = tpu.matmul %122, %123, %cst_45 {dimension_numbers = #tpu.dot_dimension_numbers<[1], [0], [0], [1], [0, 0, 1, 1], [], []>} : vector<8x16xf32>, vector<16x64xf32>, vector<8x64xf32> -> vector<8x64xf32>
    %125 = arith.addf %103, %124 : vector<8x64xf32>
    %126 = arith.addf %1, %125 : vector<8x64xf32>
    %c0_46 = arith.constant 0 : index
    %c0_47 = arith.constant 0 : index
    %127 = vector.load %arg7[%c0_46, %c0_47] : memref<1x64xf32, #tpu.memory_space<vmem>>, vector<1x64xf32>
    %128 = vector.broadcast %127 : vector<1x64xf32> to vector<8x64xf32>
    %129 = arith.addf %126, %128 : vector<8x64xf32>
    %cst_48 = arith.constant dense<0.000000e+00> : vector<8xf32>
    %130 = vector.multi_reduction <add>, %129, %cst_48 [1] : vector<8x64xf32> to vector<8xf32>
    %131 = vector.shape_cast %130 : vector<8xf32> to vector<8x1xf32>
    %cst_49 = arith.constant 6.400000e+01 : f32
    %132 = vector.broadcast %cst_49 : f32 to vector<8x1xf32>
    %133 = arith.divf %131, %132 : vector<8x1xf32>
    %134 = vector.broadcast %133 : vector<8x1xf32> to vector<8x64xf32>
    %135 = arith.subf %129, %134 : vector<8x64xf32>
    %136 = vector.broadcast %133 : vector<8x1xf32> to vector<8x64xf32>
    %137 = arith.subf %129, %136 : vector<8x64xf32>
    %138 = arith.mulf %135, %137 : vector<8x64xf32>
    %cst_50 = arith.constant dense<0.000000e+00> : vector<8xf32>
    %139 = vector.multi_reduction <add>, %138, %cst_50 [1] : vector<8x64xf32> to vector<8xf32>
    %140 = vector.shape_cast %139 : vector<8xf32> to vector<8x1xf32>
    %cst_51 = arith.constant 6.400000e+01 : f32
    %141 = vector.broadcast %cst_51 : f32 to vector<8x1xf32>
    %142 = arith.divf %140, %141 : vector<8x1xf32>
    %143 = vector.broadcast %133 : vector<8x1xf32> to vector<8x64xf32>
    %144 = arith.subf %129, %143 : vector<8x64xf32>
    %cst_52 = arith.constant 9.99999974E-6 : f32
    %145 = vector.broadcast %cst_52 : f32 to vector<8x1xf32>
    %146 = arith.addf %142, %145 : vector<8x1xf32>
    %147 = math.rsqrt %146 : vector<8x1xf32>
    %148 = vector.broadcast %147 : vector<8x1xf32> to vector<8x64xf32>
    %149 = arith.mulf %144, %148 : vector<8x64xf32>
    %c0_53 = arith.constant 0 : index
    %c0_54 = arith.constant 0 : index
    %150 = vector.load %arg8[%c0_53, %c0_54] : memref<1x64xf32, #tpu.memory_space<vmem>>, vector<1x64xf32>
    %151 = vector.broadcast %150 : vector<1x64xf32> to vector<8x64xf32>
    %152 = arith.mulf %149, %151 : vector<8x64xf32>
    %c0_55 = arith.constant 0 : index
    %c0_56 = arith.constant 0 : index
    %153 = vector.load %arg9[%c0_55, %c0_56] : memref<1x64xf32, #tpu.memory_space<vmem>>, vector<1x64xf32>
    %154 = vector.broadcast %153 : vector<1x64xf32> to vector<8x64xf32>
    %155 = arith.addf %152, %154 : vector<8x64xf32>
    %c0_57 = arith.constant 0 : index
    %c0_58 = arith.constant 0 : index
    %156 = vector.load %arg10[%c0_57, %c0_58] : memref<64x256xf32, #tpu.memory_space<vmem>>, vector<64x256xf32>
    %cst_59 = arith.constant dense<0.000000e+00> : vector<8x256xf32>
    %157 = tpu.matmul %155, %156, %cst_59 {dimension_numbers = #tpu.dot_dimension_numbers<[1], [0], [0], [1], [0, 0, 1, 1], [], []>} : vector<8x64xf32>, vector<64x256xf32>, vector<8x256xf32> -> vector<8x256xf32>
    %c0_60 = arith.constant 0 : index
    %c0_61 = arith.constant 0 : index
    %158 = vector.load %arg11[%c0_60, %c0_61] : memref<1x256xf32, #tpu.memory_space<vmem>>, vector<1x256xf32>
    %159 = vector.broadcast %158 : vector<1x256xf32> to vector<8x256xf32>
    %160 = arith.addf %157, %159 : vector<8x256xf32>
    %cst_62 = arith.constant 5.000000e-01 : f32
    %161 = vector.broadcast %cst_62 : f32 to vector<8x256xf32>
    %162 = arith.mulf %161, %160 : vector<8x256xf32>
    %cst_63 = arith.constant 0.707106769 : f32
    %163 = vector.broadcast %cst_63 : f32 to vector<8x256xf32>
    %164 = arith.mulf %160, %163 : vector<8x256xf32>
    %165 = math.erf %164 : vector<8x256xf32>
    %cst_64 = arith.constant 1.000000e+00 : f32
    %166 = vector.broadcast %cst_64 : f32 to vector<8x256xf32>
    %167 = arith.addf %166, %165 : vector<8x256xf32>
    %168 = arith.mulf %162, %167 : vector<8x256xf32>
    %c0_65 = arith.constant 0 : index
    %c0_66 = arith.constant 0 : index
    %169 = vector.load %arg12[%c0_65, %c0_66] : memref<256x64xf32, #tpu.memory_space<vmem>>, vector<256x64xf32>
    %cst_67 = arith.constant dense<0.000000e+00> : vector<8x64xf32>
    %170 = tpu.matmul %168, %169, %cst_67 {dimension_numbers = #tpu.dot_dimension_numbers<[1], [0], [0], [1], [0, 0, 1, 1], [], []>} : vector<8x256xf32>, vector<256x64xf32>, vector<8x64xf32> -> vector<8x64xf32>
    %c0_68 = arith.constant 0 : index
    %c0_69 = arith.constant 0 : index
    %171 = vector.load %arg13[%c0_68, %c0_69] : memref<1x64xf32, #tpu.memory_space<vmem>>, vector<1x64xf32>
    %172 = vector.broadcast %171 : vector<1x64xf32> to vector<8x64xf32>
    %173 = arith.addf %170, %172 : vector<8x64xf32>
    %174 = arith.addf %129, %173 : vector<8x64xf32>
    %c0_70 = arith.constant 0 : index
    %c0_71 = arith.constant 0 : index
    %c0_72 = arith.constant 0 : index
    %175 = vector.load %arg14[%c0_70, %c0_71, %c0_72] : memref<1x8x64xf32, #tpu.memory_space<vmem>>, vector<1x8x64xf32>
    %176 = vector.shape_cast %175 : vector<1x8x64xf32> to vector<8x64xf32>
    %177 = vector.shape_cast %174 : vector<8x64xf32> to vector<1x8x64xf32>
    tpu.vector_store %arg14[%c0_70, %c0_71, %c0_72], %177 {strides = array<i32>} : memref<1x8x64xf32, #tpu.memory_space<vmem>>, vector<1x8x64xf32>,
    return
  }
  func.func @transform_0(%arg0: i32) -> (i32, i32, i32) {
    %c0_i32 = arith.constant 0 : i32
    %c0_i32_0 = arith.constant 0 : i32
    %c0_i32_1 = arith.constant 0 : i32
    return %arg0, %c0_i32, %c0_i32_0 : i32, i32, i32
  }
  func.func @transform_1(%arg0: i32) -> (i32, i32) {
    %c0_i32 = arith.constant 0 : i32
    %c0_i32_0 = arith.constant 0 : i32
    %c0_i32_1 = arith.constant 0 : i32
    return %c0_i32, %c0_i32_0 : i32, i32
  }
  func.func @transform_2(%arg0: i32) -> (i32, i32) {
    %c0_i32 = arith.constant 0 : i32
    %c0_i32_0 = arith.constant 0 : i32
    %c0_i32_1 = arith.constant 0 : i32
    return %c0_i32, %c0_i32_0 : i32, i32
  }
  func.func @transform_3(%arg0: i32) -> (i32, i32) {
    %c0_i32 = arith.constant 0 : i32
    %c0_i32_0 = arith.constant 0 : i32
    %c0_i32_1 = arith.constant 0 : i32
    return %c0_i32, %c0_i32_0 : i32, i32
  }
  func.func @transform_4(%arg0: i32) -> (i32, i32) {
    %c0_i32 = arith.constant 0 : i32
    %c0_i32_0 = arith.constant 0 : i32
    %c0_i32_1 = arith.constant 0 : i32
    return %c0_i32, %c0_i32_0 : i32, i32
  }
  func.func @transform_5(%arg0: i32) -> (i32, i32) {
    %c0_i32 = arith.constant 0 : i32
    %c0_i32_0 = arith.constant 0 : i32
    %c0_i32_1 = arith.constant 0 : i32
    return %c0_i32, %c0_i32_0 : i32, i32
  }
  func.func @transform_6(%arg0: i32) -> (i32, i32) {
    %c0_i32 = arith.constant 0 : i32
    %c0_i32_0 = arith.constant 0 : i32
    %c0_i32_1 = arith.constant 0 : i32
    return %c0_i32, %c0_i32_0 : i32, i32
  }
  func.func @transform_7(%arg0: i32) -> (i32, i32) {
    %c0_i32 = arith.constant 0 : i32
    %c0_i32_0 = arith.constant 0 : i32
    %c0_i32_1 = arith.constant 0 : i32
    return %c0_i32, %c0_i32_0 : i32, i32
  }
  func.func @transform_8(%arg0: i32) -> (i32, i32) {
    %c0_i32 = arith.constant 0 : i32
    %c0_i32_0 = arith.constant 0 : i32
    %c0_i32_1 = arith.constant 0 : i32
    return %c0_i32, %c0_i32_0 : i32, i32
  }
  func.func @transform_9(%arg0: i32) -> (i32, i32) {
    %c0_i32 = arith.constant 0 : i32
    %c0_i32_0 = arith.constant 0 : i32
    %c0_i32_1 = arith.constant 0 : i32
    return %c0_i32, %c0_i32_0 : i32, i32
  }
  func.func @transform_10(%arg0: i32) -> (i32, i32) {
    %c0_i32 = arith.constant 0 : i32
    %c0_i32_0 = arith.constant 0 : i32
    %c0_i32_1 = arith.constant 0 : i32
    return %c0_i32, %c0_i32_0 : i32, i32
  }
  func.func @transform_11(%arg0: i32) -> (i32, i32) {
    %c0_i32 = arith.constant 0 : i32
    %c0_i32_0 = arith.constant 0 : i32
    %c0_i32_1 = arith.constant 0 : i32
    return %c0_i32, %c0_i32_0 : i32, i32
  }
  func.func @transform_12(%arg0: i32) -> (i32, i32) {
    %c0_i32 = arith.constant 0 : i32
    %c0_i32_0 = arith.constant 0 : i32
    %c0_i32_1 = arith.constant 0 : i32
    return %c0_i32, %c0_i32_0 : i32, i32
  }
  func.func @transform_13(%arg0: i32) -> (i32, i32, i32) {
    %c0_i32 = arith.constant 0 : i32
    %c0_i32_0 = arith.constant 0 : i32
    %c0_i32_1 = arith.constant 0 : i32
    return %arg0, %c0_i32, %c0_i32_0 : i32, i32, i32
  }
}

</mosaic_0001>

<bundles_post_ra>
// kernel: tpu_custom_call.1
= control target key start
LH: loop header
LB: loop body
LE: loop exit
PB: predicated region body
PF: predicated region fallthrough
CT: control target
= control target key end

     0   :  { %s2807_s0 = inlined_call_operand.vmem [shape: f32[2,8,64], index: 0, kind: input, shape index: {}]   ;;  %s2808_s1 = inlined_call_operand.vmem [shape: f32[1,64], index: 1, kind: input, shape index: {}]   ;;  %s2809_s2 = inlined_call_operand.vmem [shape: f32[1,64], index: 2, kind: input, shape index: {}]   ;;  %s2810_s3 = inlined_call_operand.vmem [shape: f32[64,192], index: 3, kind: input, shape index: {}]   ;;  %s2811_s4 = inlined_call_operand.vmem [shape: f32[1,192], index: 4, kind: input, shape index: {}]   ;;  %s2812_s5 = inlined_call_operand.vmem [shape: f32[64,64], index: 5, kind: input, shape index: {}]   ;;  %s2813_s6 = inlined_call_operand.vmem [shape: f32[1,64], index: 6, kind: input, shape index: {}]   ;;  %s2814_s7 = inlined_call_operand.vmem [shape: f32[1,64], index: 7, kind: input, shape index: {}]   ;;  %s2815_s8 = inlined_call_operand.vmem [shape: f32[1,64], index: 8, kind: input, shape index: {}]   ;;  %s2816_s9 = inlined_call_operand.vmem [shape: f32[64,256], index: 9, kind: input, shape index: {}]   ;;  %s2817_s10 = inlined_call_operand.vmem [shape: f32[1,256], index: 10, kind: input, shape index: {}]   ;;  %s2818_s11 = inlined_call_operand.vmem [shape: f32[256,64], index: 11, kind: input, shape index: {}]   ;;  %s2819_s12 = inlined_call_operand.vmem [shape: f32[1,64], index: 12, kind: input, shape index: {}]   ;;  %s2820_s13 = inlined_call_operand.hbm [shape: f32[2,8,64], index: 13, kind: output, shape index: {}]  }
   0x1   :  { %2821 = sst [smem:[#allocation6_spill]] %s2807_s0 }
   0x2   :  { %2822 = sst [smem:[#allocation7_spill]] %s2808_s1 }
   0x3   :  { %18 = vsyncpa [#allocation3], 0 }
   0x4   :  { %20 = vsyncpa [#allocation3 + $0x1], 0  ;;  %s2337_s25 = smov 0   ;;  %s2339_s26 = smov 0  }
   0x5   :  { %s2341_s27 = smov 0   ;;  %s2343_s28 = smov 0  }
   0x6 LB: > { %s2358_s29 = sadd.s32 4294967295, %s2254_s28   ;;  %s1878_s30 = sadd.s32 4294967294, %s2254_s28   ;;  %s2254_s28 = sphi %s2343_s28, %s2832_s28   ;;  %s2250_s27 = sphi %s2341_s27, %s2831_s27   ;;  %s2246_s26 = sphi %s2339_s26, %s2830_s26   ;;  %s2242_s25 = sphi %s2337_s25, %s2829_s25  }
   0x7   : > { %s2362_s14 = sadd.s32 1, %s2254_s28   ;;  %s311_s15 = sadd.s32 1, %s2250_s27 }
   0x8   : > { %s308_s16 = ssub.s32 %s2254_s28, %s2362_s14  ;;  %p321_p0 = scmp.ne.s32.totalorder %s2250_s27, %s2246_s26 }
   0x9   : > { %p309_p1 = scmp.eq.s32.totalorder %s308_s16, 0  ;;  %p322_p2 = scmp.eq.s32.totalorder %s2358_s29, 1 }
   0xa   : > { %p327_p3 = scmp.ne.s32.totalorder %s2246_s26, %s2242_s25  ;;  %p328_p4 = scmp.eq.s32.totalorder %s1878_s30, 1 }
   0xb   : > { %s2373_s17 = scalar_select %p309_p1, %s2250_s27, %s311_s15  }
   0xc   : > { %p2375_p5 = por %p322_p2, %p321_p0  ;;  %p2379_p6 = por %p328_p4, %p327_p3 }
   0xd   : > { %2823 = sst [smem:[#allocation5_spill]] %s2373_s17  ;;  %p1881_p7 = scmp.ge.s32.totalorder %s2254_s28, 1 }
   0xe   : > { %p389_p8 = scmp.lt.s32.totalorder %s2254_s28, 3 }
  0x10   : > { %p390_p9 = pnand %p1881_p7, %p389_p8 }
  0x11   : > { %p432_p10 = scmp.lt.s32.totalorder (!%p390_p9), %s2358_s29, 1  ;;  %vm437_vm0 = vcmask (!%p390_p9), 523264   ;;  %s2826_s0 = sld [smem:[#allocation6_spill]] (!%p390_p9)  ;;  %v469_v7 = vld [vmem:[%s2810_s3 + $0x8] sm:$0xff] (!%p390_p9)  ;;  %v471_v8 = vld [vmem:[%s2810_s3 + $0x18] sm:$0xff] (!%p390_p9)  ;;  %v468_v10 = vld [vmem:[%s2810_s3] sm:$0xff] (!%p390_p9)  ;;  %v486_v41 = vlaneseq (!%p390_p9) }
  0x12   : > { %393 = sbr.rel (%p390_p9) target bundleno = 3692 (0xe6c), region = 72  ;;  %v2043_v9 = vpack.c.bf16 (!%p390_p9), %v471_v8, %v469_v7  ;;  %v470_v11 = vld [vmem:[%s2810_s3 + $0x10] sm:$0xff] (!%p390_p9)  ;;  %v473_v13 = vld [vmem:[%s2810_s3 + $0x28] sm:$0xff] (!%p390_p9)  ;;  %v475_v14 = vld [vmem:[%s2810_s3 + $0x38] sm:$0xff] (!%p390_p9)  ;;  %v2256_v20 = vmov (!%p390_p9), 0.0   ;;  %s2827_s1 = sld [smem:[#allocation7_spill]] (!%p390_p9) }
  0x13   : > { %v2045_v12 = vpack.c.bf16 (!%p390_p9), %v470_v11, %v468_v10  ;;  %v472_v15 = vld [vmem:[%s2810_s3 + $0x20] sm:$0xff] (!%p390_p9)  ;;  %v2047_v16 = vpack.c.bf16 (!%p390_p9), %v475_v14, %v473_v13  ;;  %v474_v17 = vld [vmem:[%s2810_s3 + $0x30] sm:$0xff] (!%p390_p9)  ;;  %v477_v18 = vld [vmem:[%s2810_s3 + $0x48] sm:$0xff] (!%p390_p9)  ;;  %563 = vmatprep.mubr.f32.mxu0 (!%p390_p9), %v2256_v20  ;;  %1985 = vmatprep.subr.mxu1 (!%p390_p9), %v2256_v20  ;;  %v2454_v42 = vshrl.u32 (!%p390_p9), %v486_v41, 7  ;;  %vm2257_vm1 = vmmov (!%p390_p9), 0   ;;  %s2259_s17 = smov (!%p390_p9), 48  }
  0x14   : > { %2044 = vmatprep.subr.bf16.mxu0 (!%p390_p9), %v2043_v9  ;;  %v479_v19 = vld [vmem:[%s2810_s3 + $0x58] sm:$0xff] (!%p390_p9)  ;;  %v2049_v21 = vpack.c.bf16 (!%p390_p9), %v474_v17, %v472_v15  ;;  %v476_v23 = vld [vmem:[%s2810_s3 + $0x40] sm:$0xff] (!%p390_p9)  ;;  %v478_v24 = vld [vmem:[%s2810_s3 + $0x50] sm:$0xff] (!%p390_p9)  ;;  %1987 = vmatprep.mubr.msk.f32.mxu1 (!%p390_p9), %vm2257_vm1, %v2256_v20  ;;  %s2260_s30 = smov (!%p390_p9), 112   ;;  %vm586_vm2 = vcmask (!%p390_p9), 130048   ;;  %v2488_v55 = vand.u32 (!%p390_p9), 127, %v486_v41 }
  0x15   : > { %2046 = vmatpush1.bf16.msra.mxu0 (!%p390_p9), %v2045_v12  ;;  %v2051_v22 = vpack.c.bf16 (!%p390_p9), %v479_v19, %v477_v18  ;;  %v481_v25 = vld [vmem:[%s2810_s3 + $0x68] sm:$0xff] (!%p390_p9)  ;;  %v483_v26 = vld [vmem:[%s2810_s3 + $0x78] sm:$0xff] (!%p390_p9)  ;;  %v2053_v27 = vpack.c.bf16 (!%p390_p9), %v478_v24, %v476_v23  ;;  %v480_v29 = vld [vmem:[%s2810_s3 + $0x60] sm:$0xff] (!%p390_p9)  ;;  %v488_v43 = vsub.s32 (!%p390_p9), 0, %v2454_v42  ;;  %v492_v49 = vsub.s32 (!%p390_p9), 1, %v2454_v42  ;;  %s2261_s15 = smov (!%p390_p9), 32  }
  0x16   : > { %2048 = vmatprep.subr.bf16.mxu0 (!%p390_p9), %v2047_v16  ;;  %v2055_v28 = vpack.c.bf16 (!%p390_p9), %v483_v26, %v481_v25  ;;  %v482_v30 = vld [vmem:[%s2810_s3 + $0x70] sm:$0xff] (!%p390_p9)  ;;  %v1885_v38 = vld [vmem:[%s2809_s2] ss:$0 sm:$0xff] (!%p390_p9)  ;;  %vm574_vm3 = vcmp.le.s32.totalorder (!%p390_p9), %v2488_v55, %v2454_v42  ;;  %vm663_vm4 = vcmask (!%p390_p9), 64512   ;;  %s2262_s16 = smov (!%p390_p9), 96   ;;  %v2263_v17 = vmov (!%p390_p9), 0.0|0.0  }
  0x17   : > { %v2057_v31 = vpack.c.bf16 (!%p390_p9), %v482_v30, %v480_v29  ;;  %v484_v44 = vld [vmem:[%s2811_s4] sm:$0x3] (!%p390_p9)  ;;  %v576_v19 = vld [vmem:[%s2812_s5 + $0x8] sm:$0xff] (!%p390_p9)  ;;  %v577_v23 = vld [vmem:[%s2812_s5 + $0x10] sm:$0xff] (!%p390_p9) }
  0x18   : > { %v1884_v36 = vld [vmem:[%s2827_s1] ss:$0 sm:$0xff] (!%p390_p9)  ;;  %v489_v45 = vrot.slane (!%p390_p9), %v484_v44, %v488_v43  ;;  %v493_v50 = vrot.slane (!%p390_p9), %v484_v44, %v492_v49  ;;  %v578_v24 = vld [vmem:[%s2812_s5 + $0x18] sm:$0xff] (!%p390_p9)  ;;  %v581_v55 = vld [vmem:[%s2812_s5 + $0x30] sm:$0xff] (!%p390_p9) }
  0x19   : > { %s433_s20 = scalar_select %p432_p10, %s2358_s29, 1  ;;  %2050 = vmatpush1.bf16.msra.mxu0 %v2049_v21  ;;  %v575_v18 = vld [vmem:[%s2812_s5] sm:$0xff]  ;;  %v2060_v26 = vpack.c.bf16 %v578_v24, %v577_v23 }
  0x1a   : > { %2052 = vmatprep.subr.bf16.mxu0 %v2051_v22  ;;  %v2063_v21 = vpack.c.bf16 %v576_v19, %v575_v18 }
  0x1b   : > { %s1883_s21 = sshll.u32 %s433_s20, 3  ;;  %s1909_s20 = sshll.u32 %s2358_s29, 7 }
  0x1c   : > { %s435_s24 = scalar_lea.vmem %s2826_s0, %s1883_s21  ;;  %s2258_s0 = smov 64  }
  0x1d   : > { %v2390_v0 = vld [vmem:[%s435_s24] sm:$0xff]  ;;  %2054 = vmatpush1.bf16.msra.mxu0 %v2053_v27  ;;  %s2764_s24 = scalar_lea.hbm %s2820_s13, %s1909_s20  ;;  %s2266_s29 = smov [#allocation2]  }
  0x1e   : > { %v438_v1 = vsel %vm437_vm0, %v2390_v0, 0.0  ;;  %2056 = vmatprep.subr.bf16.mxu0 %v2055_v28 }
  0x1f   : > { %439 = vadd.xlane.f32.xlu0 %v438_v1 }
  0x21   : > { %2058 = vmatpush1.bf16.msra.mxu0 %v2057_v31 }
  0x22   : > { %1975 = vmatprep.subr.mxu0 %v2256_v20 }
  0xac   : > { %v440_v2 = vpop.xlane.xlu0 %439 }
  0xad   : > { %v442_v3 = vmul.f32 0.015625, %v440_v2 }
  0xaf   : > { %v443_v4 = vsub.f32 %v2390_v0, %v442_v3 }
  0xb1   : > { %v444_v5 = vmul.f32 %v443_v4, %v443_v4 }
  0xb3   : > { %v445_v6 = vsel %vm437_vm0, %v444_v5, 0.0 }
  0xb4   : > { %446 = vadd.xlane.f32.xlu0 %v445_v6 }
 0x141   : > { %v447_v32 = vpop.xlane.xlu0 %446 }
 0x142   : > { %v448_v33 = vmul.f32 0.015625, %v447_v32 }
 0x144   : > { %v449_v34 = vadd.f32 1e-05, %v448_v33 }
 0x146   : > { %2168 = vrsqrt.f32 %v449_v34 }
 0x150   : > { %v2169_v35 = vpop.eup %2168 }
 0x151   : > { %v451_v37 = vmul.f32 %v2169_v35, %v443_v4 }
 0x153   : > { %v459_v39 = vmul.f32 %v1884_v36, %v451_v37 }
 0x155   : > { %v467_v40 = vadd.f32 %v1885_v38, %v459_v39 }
 0x157   : > { %1886 = vmatmul.mubr.msk.f32.vlgmr.msra.gmra.mrb[0].mxu0 %vm437_vm0, %v467_v40 }
 0x158   : > { %1977 = vmatprep.mubr.msk.f32.mxu0 %vm2257_vm1, %v2256_v20 }
 0x22a   : > { %v565_v46 = vpop.f32.mrb[0].mxu0 }
 0x22b   : > { %v2466_v47 = vadd.f32 %v565_v46, %v489_v45  ;;  %v567_v48 = vpop.f32.mrb[1].mxu0 }
 0x22c   : > { %v2478_v53 = vadd.f32 %v567_v48, %v493_v50 }
 0x22d   : > { %584 = vrot.lane.b32.xlu0 %v2466_v47, %s2258_s0  ;;  %750 = vrot.lane.b32.xlu1 %v2466_v47, %s2259_s17  ;;  %s429_s17 = sand.u32 1, %s2246_s26  }
 0x22e   : > { %s1806_s0 = scalar_lea.sflag [#allocation3], %s429_s17 }
 0x231   : > { %748 = vrot.lane.b32.xlu1 %v2466_v47, %s2260_s30 }
 0x29f   : > { %v585_v51 = vpop.permute.xlu0 %584  ;;  %v751_v52 = vpop.permute.xlu1 %750 }
 0x2a0   : > { %1976 = vmatpush3.xpose.msk.msra.mxu0 %vm586_vm2, %v585_v51  ;;  %1986 = vmatpush3.xpose.msk.msra.mxu1 %vm586_vm2, %v751_v52 }
 0x2a1   : > { %1980 = vmatprep.subr.mxu0 %v2256_v20  ;;  %1990 = vmatprep.subr.mxu1 %v2256_v20 }
 0x2a3   : > { %1978 = vmatmul.mubr.msk.f32.vlgmr.msra.gmra.mrb[2].mxu0 %vm586_vm2, %v2466_v47  ;;  %v749_v54 = vpop.permute.xlu1 %748 }
 0x2a4   : > { %1981 = vmatpush3.msra.mxu0 %v2478_v53  ;;  %1988 = vmatmul.mubr.msk.f32.vlgmr.msra.gmra.mrb[0].mxu1 %vm586_vm2, %v749_v54 }
 0x2a5   : > { %1992 = vmatprep.mubr.msk.f32.mxu1 %vm2257_vm1, %v2256_v20  ;;  %1982 = vmatprep.mubr.msk.f32.mxu0 %vm2257_vm1, %v2256_v20 }
 0x2a6   : > { %2059 = vmatprep.subr.bf16.mxu0 %v2263_v17 }
 0x376   : > { %v657_v56 = vpop.f32.mrb[2].mxu0 }
 0x377   : > { %v1979_v57 = vpop.f32.mrb[3].mxu0  ;;  %v822_v58 = vpop.f32.mrb[0].mxu1  ;;  %v661_v4 = vmul.f32 0.25, %v657_v56  ;;  %v579_v56 = vld [vmem:[%s2812_s5 + $0x20] sm:$0xff] }
 0x378   : > { %v826_v59 = vmul.f32 0.25, %v822_v58  ;;  %v1989_v60 = vpop.f32.mrb[1].mxu1  ;;  %v580_v57 = vld [vmem:[%s2812_s5 + $0x28] sm:$0xff] }
 0x379   : > { %v662_v7 = vsel %vm574_vm3, %v661_v4, -1e+30  ;;  %v2066_v58 = vpack.c.bf16 %v580_v57, %v579_v56  ;;  %v1595_v57 = vld [vmem:[%s2816_s9 + $0x68] sm:$0xff] }
 0x37a   : > { %v827_v61 = vsel %vm574_vm3, %v826_v59, -1e+30  ;;  %v664_v8 = vsel %vm663_vm4, %v662_v7, -inf }
 0x37b   : > { %v828_v62 = vsel %vm663_vm4, %v827_v61, -inf }
 0x37c   : > { %829 = vmax.xlane.f32.xlu1 %v828_v62 }
 0x38d   : > { %840 = vrot.lane.b32.xlu1 %v2478_v53, %s2260_s30  ;;  %s1882_s30 = sshll.u32 %s429_s17, 3 }
 0x38e   : > { %s431_s1 = scalar_lea.vmem [#allocation2], %s1882_s30  ;;  %s2196_s30 = sshll.u32 %s2266_s29, 4  ;;  %s2197_s30 = int_to_ptr.vmem [resolvable:$false] %s2196_s30 }
 0x38f   : > { %s1819_s21 = sshll.u32 %s431_s1, 4  ;;  %s2766_s21 = int_to_ptr.vmem [resolvable:$true] %s1819_s21 }
 0x390   : > { %p2199_p0 = scmp.lt.s32.totalorder %s2766_s21, %s2197_s30 }
 0x409   : > { %v830_v63 = vpop.xlane.xlu1 %829 }
 0x40a   : > { %v831_v1 = vsub.f32 %v827_v61, %v830_v63 }
 0x40c   : > { %v832_v2 = vmul.f32 1.442695, %v831_v1 }
 0x40d   : > { %v841_v3 = vpop.permute.xlu1 %840 }
 0x40e   : > { %2170 = vpow2.f32 %v832_v2  ;;  %1991 = vmatpush3.msra.mxu1 %v841_v3 }
 0x40f   : > { %2062 = vmatprep.subr.bf16.mxu1 %v2263_v17 }
 0x418   : > { %v2171_v5 = vpop.eup %2170 }
 0x419   : > { %v834_v6 = vsel %vm663_vm4, %v2171_v5, 0.0 }
 0x41a   : > { %835 = vadd.xlane.f32.xlu0 %v834_v6 }
 0x41e   : > { %665 = vmax.xlane.f32.xlu0 %v664_v8 }
 0x434   : > { %1064 = vrot.lane.b32.xlu0 %v2466_v47, %s2261_s15  ;;  %s2264_s15 = smov 80  }
 0x438   : > { %1062 = vrot.lane.b32.xlu0 %v2466_v47, %s2262_s16 }
 0x4a7   : > { %v836_v9 = vpop.xlane.xlu0 %835 }
 0x4a8   : > { %2172 = vrcp.f32 %v836_v9 }
 0x4ab   : > { %v666_v10 = vpop.xlane.xlu0 %665 }
 0x4ac   : > { %v667_v11 = vsub.f32 %v662_v7, %v666_v10 }
 0x4ae   : > { %v668_v12 = vmul.f32 1.442695, %v667_v11 }
 0x4af   : > { %v1065_v28 = vpop.permute.xlu0 %1064 }
 0x4b0   : > { %2174 = vpow2.f32 %v668_v12 }
 0x4b2   : > { %v2173_v13 = vpop.eup %2172 }
 0x4b3   : > { %v838_v14 = vmul.f32 %v2173_v13, %v2171_v5  ;;  %v1063_v31 = vpop.permute.xlu0 %1062  ;;  %v582_v13 = vld [vmem:[%s2812_s5 + $0x38] sm:$0xff] }
 0x4b5   : > { %1993 = vmatmul.mubr.msk.f32.vlgmr.msra.gmra.mrb[2].mxu1 %vm663_vm4, %v838_v14  ;;  %v2069_v14 = vpack.c.bf16 %v582_v13, %v581_v55  ;;  %v1698_v13 = vld [vmem:[%s2818_s11 + $0x20] sm:$0xff] }
 0x4b6   : > { %2006 = vmatprep.mubr.msk.f32.mxu1 %vm2257_vm1, %v2256_v20  ;;  %2064 = vmatpush3.bf16.msra.mxu1 %v2063_v21 }
 0x4b7   : > { %2014 = vmatprep.subr.mxu1 %v2256_v20 }
 0x4ba   : > { %v2175_v15 = vpop.eup %2174 }
 0x4bb   : > { %v670_v16 = vsel %vm663_vm4, %v2175_v15, 0.0 }
 0x4bc   : > { %671 = vadd.xlane.f32.xlu1 %v670_v16 }
 0x4cd   : > { %1153 = vrot.lane.b32.xlu1 %v2478_v53, %s2262_s16  ;;  %s2265_s16 = smov 16  }
 0x549   : > { %v672_v22 = vpop.xlane.xlu1 %671 }
 0x54a   : > { %2176 = vrcp.f32 %v672_v22 }
 0x54d   : > { %v1154_v33 = vpop.permute.xlu1 %1153 }
 0x554   : > { %v2177_v25 = vpop.eup %2176 }
 0x555   : > { %v674_v27 = vmul.f32 %v2177_v25, %v2175_v15 }
 0x557   : > { %1983 = vmatmul.mubr.msk.f32.vlgmr.msra.gmra.mrb[4].mxu0 %vm663_vm4, %v674_v27 }
 0x558   : > { %2061 = vmatpush3.bf16.msra.mxu0 %v2060_v26  ;;  %1999 = vmatprep.mubr.msk.f32.mxu0 %vm2257_vm1, %v2256_v20  ;;  %v1903_v26 = vld [vmem:[%s2813_s6] ss:$0 sm:$0xff] }
 0x559   : > { %2009 = vmatprep.subr.mxu0 %v2256_v20 }
 0x588   : > { %v912_v29 = vpop.f32.mrb[2].mxu1 }
 0x589   : > { %v1994_v30 = vpop.f32.mrb[3].mxu1  ;;  %2000 = vmatmul.mubr.msk.f32.vlgmr.msra.gmra.mrb[6].mxu0 %vm586_vm2, %v912_v29 }
 0x58a   : > { %2010 = vmatpush3.xpose.msk.msra.mxu0 %vm586_vm2, %v1065_v28  ;;  %2011 = vmatprep.mubr.msk.f32.mxu0 %vm2257_vm1, %v2256_v20 }
 0x58b   : > { %2065 = vmatprep.subr.bf16.mxu0 %v2263_v17 }
 0x58d   : > { %2012 = vmatmul.mubr.msk.f32.vlgmr.msra.gmra.mrb[8].mxu0 %vm586_vm2, %v1063_v31 }
 0x58e   : > { %2023 = vmatprep.mubr.msk.f32.mxu0 %vm2257_vm1, %v2256_v20  ;;  %2067 = vmatpush3.bf16.msra.mxu0 %v2066_v58  ;;  %v1597_v58 = vld [vmem:[%s2816_s9 + $0x78] sm:$0xff] }
 0x58f   : > { %2031 = vmatprep.subr.mxu0 %v2256_v20 }
 0x62a   : > { %v744_v32 = vpop.f32.mrb[4].mxu0 }
 0x62b   : > { %v1984_v34 = vpop.f32.mrb[5].mxu0  ;;  %2007 = vmatmul.mubr.msk.f32.vlgmr.msra.gmra.mrb[4].mxu1 %vm586_vm2, %v744_v32 }
 0x62c   : > { %2015 = vmatpush3.msra.mxu1 %v1154_v33  ;;  %2016 = vmatprep.mubr.msk.f32.mxu1 %vm2257_vm1, %v2256_v20  ;;  %v1585_v34 = vld [vmem:[%s2816_s9 + $0x18] sm:$0xff] }
 0x62d   : > { %2026 = vmatprep.subr.mxu1 %v2256_v20 }
 0x65c   : > { %v985_v35 = vpop.f32.mrb[6].mxu0 }
 0x65d   : > { %v2001_v36 = vpop.f32.mrb[7].mxu0 }
 0x65e   : > { %v1582_v36 = vld [vmem:[%s2816_s9] sm:$0xff] }
 0x660   : > { %v1136_v37 = vpop.f32.mrb[8].mxu0 }
 0x661   : > { %v1140_v38 = vmul.f32 0.25, %v1136_v37  ;;  %v2013_v39 = vpop.f32.mrb[9].mxu0  ;;  %v1584_v37 = vld [vmem:[%s2816_s9 + $0x10] sm:$0xff] }
 0x662   : > { %v1587_v39 = vld [vmem:[%s2816_s9 + $0x28] sm:$0xff] }
 0x663   : > { %v1141_v40 = vsel %vm574_vm3, %v1140_v38, -1e+30  ;;  %v2073_v38 = vpack.c.bf16 %v1584_v37, %v1582_v36  ;;  %v1720_v36 = vld [vmem:[%s2818_s11 + $0xd0] sm:$0xff]  ;;  %v1721_v37 = vld [vmem:[%s2818_s11 + $0xd8] sm:$0xff] }
 0x664   : > { %v1142_v41 = vsel %vm663_vm4, %v1141_v40, -inf }
 0x665   : > { %1143 = vmax.xlane.f32.xlu0 %v1142_v41 }
 0x67b   : > { %1303 = vrot.lane.b32.xlu0 %v2466_v47, %s2264_s15 }
 0x6f2   : > { %v1144_v44 = vpop.xlane.xlu0 %1143 }
 0x6f3   : > { %v1145_v45 = vsub.f32 %v1141_v40, %v1144_v44  ;;  %v1589_v40 = vld [vmem:[%s2816_s9 + $0x38] sm:$0xff]  ;;  %v1586_v44 = vld [vmem:[%s2816_s9 + $0x20] sm:$0xff] }
 0x6f4   : > { %v2075_v41 = vpack.c.bf16 %v1589_v40, %v1587_v39  ;;  %v1704_v39 = vld [vmem:[%s2818_s11 + $0x50] sm:$0xff]  ;;  %v1705_v40 = vld [vmem:[%s2818_s11 + $0x58] sm:$0xff] }
 0x6f5   : > { %v1146_v46 = vmul.f32 1.442695, %v1145_v45  ;;  %v1588_v45 = vld [vmem:[%s2816_s9 + $0x30] sm:$0xff] }
 0x6f7   : > { %2178 = vpow2.f32 %v1146_v46  ;;  %v2077_v46 = vpack.c.bf16 %v1588_v45, %v1586_v44  ;;  %v1722_v44 = vld [vmem:[%s2818_s11 + $0xe0] sm:$0xff]  ;;  %v1723_v45 = vld [vmem:[%s2818_s11 + $0xe8] sm:$0xff] }
 0x6fe   : > { %v1058_v48 = vpop.f32.mrb[4].mxu1 }
 0x6ff   : > { %v1059_v50 = vadd.f32 %v1058_v48, %v985_v35  ;;  %v2008_v51 = vpop.f32.mrb[5].mxu1  ;;  %v1591_v48 = vld [vmem:[%s2816_s9 + $0x48] sm:$0xff] }
 0x701   : > { %v2179_v52 = vpop.eup %2178 }
 0x702   : > { %v1148_v54 = vsel %vm663_vm4, %v2179_v52, 0.0 }
 0x703   : > { %1149 = vadd.xlane.f32.xlu1 %v1148_v54  ;;  %v1592_v54 = vld [vmem:[%s2816_s9 + $0x50] sm:$0xff] }
 0x714   : > { %1305 = vrot.lane.b32.xlu1 %v2466_v47, %s2265_s16  ;;  %v1304_v47 = vpop.permute.xlu0 %1303  ;;  %s2198_s16 = scalar_lea.vmem %s2197_s30, 256 }
 0x790   : > { %v1150_v59 = vpop.xlane.xlu1 %1149 }
 0x791   : > { %2180 = vrcp.f32 %v1150_v59  ;;  %v2083_v59 = vpack.c.bf16 %v1597_v58, %v1595_v57  ;;  %v1708_v57 = vld [vmem:[%s2818_s11 + $0x70] sm:$0xff]  ;;  %v1709_v58 = vld [vmem:[%s2818_s11 + $0x78] sm:$0xff] }
 0x794   : > { %v1306_v62 = vpop.permute.xlu1 %1305 }
 0x79b   : > { %v2181_v60 = vpop.eup %2180 }
 0x79c   : > { %v1152_v61 = vmul.f32 %v2181_v60, %v2179_v52  ;;  %v1590_v52 = vld [vmem:[%s2816_s9 + $0x40] sm:$0xff] }
 0x79d   : > { %v2081_v56 = vpack.c.bf16 %v1592_v54, %v1590_v52  ;;  %v1594_v60 = vld [vmem:[%s2816_s9 + $0x60] sm:$0xff]  ;;  %v1724_v52 = vld [vmem:[%s2818_s11 + $0xf0] sm:$0xff]  ;;  %v1725_v54 = vld [vmem:[%s2818_s11 + $0xf8] sm:$0xff] }
 0x79e   : > { %2017 = vmatmul.mubr.msk.f32.vlgmr.msra.gmra.mrb[6].mxu1 %vm663_vm4, %v1152_v61  ;;  %v1596_v61 = vld [vmem:[%s2816_s9 + $0x70] sm:$0xff] }
 0x79f   : > { %2027 = vmatpush3.xpose.msk.msra.mxu1 %vm586_vm2, %v1306_v62  ;;  %2028 = vmatprep.mubr.msk.f32.mxu1 %vm2257_vm1, %v2256_v20  ;;  %v2085_v62 = vpack.c.bf16 %v1596_v61, %v1594_v60  ;;  %v1598_v60 = vld [vmem:[%s2817_s10] sm:$0x3] }
 0x7a0   : > { %2068 = vmatprep.subr.bf16.mxu1 %v2263_v17  ;;  %v1603_v61 = vrot.slane %v1598_v60, %v488_v43 }
 0x7a2   : > { %2029 = vmatmul.mubr.msk.f32.vlgmr.msra.gmra.mrb[8].mxu1 %vm586_vm2, %v1304_v47  ;;  %v1710_v47 = vld [vmem:[%s2818_s11 + $0x80] sm:$0xff] }
 0x7a3   : > { %2040 = vmatprep.mubr.msk.f32.mxu1 %vm2257_vm1, %v2256_v20  ;;  %2070 = vmatpush3.bf16.msra.mxu1 %v2069_v14  ;;  %v1699_v14 = vld [vmem:[%s2818_s11 + $0x28] sm:$0xff] }
 0x871   : > { %v1225_v63 = vpop.f32.mrb[6].mxu1 }
 0x872   : > { %v2018_v1 = vpop.f32.mrb[7].mxu1  ;;  %2024 = vmatmul.mubr.msk.f32.vlgmr.msra.gmra.mrb[10].mxu0 %vm586_vm2, %v1225_v63  ;;  %v1711_v63 = vld [vmem:[%s2818_s11 + $0x88] sm:$0xff] }
 0x873   : > { %2033 = vmatprep.mubr.msk.f32.mxu0 %vm2257_vm1, %v2256_v20  ;;  %v1694_v1 = vld [vmem:[%s2818_s11] sm:$0xff] }
 0x875   : > { %v1377_v2 = vpop.f32.mrb[8].mxu1 }
 0x876   : > { %v1381_v3 = vmul.f32 0.25, %v1377_v2  ;;  %v2030_v4 = vpop.f32.mrb[9].mxu1  ;;  %v2087_v2 = vpack.c.bf16 %v1711_v63, %v1710_v47 }
 0x877   : > { %v1712_v4 = vld [vmem:[%s2818_s11 + $0x90] sm:$0xff] }
 0x878   : > { %v1382_v5 = vsel %vm574_vm3, %v1381_v3, -1e+30  ;;  %v1695_v3 = vld [vmem:[%s2818_s11 + $0x8] sm:$0xff]  ;;  %2088 = vmatprep.subr.bf16.mxu1 %v2087_v2 }
 0x879   : > { %v1383_v6 = vsel %vm663_vm4, %v1382_v5, -inf }
 0x87a   : > { %1384 = vmax.xlane.f32.xlu1 %v1383_v6  ;;  %v2089_v6 = vpack.c.bf16 %v1695_v3, %v1694_v1 }
 0x88b   : > { %1394 = vrot.lane.b32.xlu1 %v2478_v53, %s2264_s15  ;;  %s2192_s15 = scalar_lea.vmem %s2766_s21, 128 }
 0x88c   : > { %p2193_p11 = scmp.ne.s32.totalorder %s2766_s21, %s2192_s15  ;;  %p2200_p1 = scmp.lt.s32.totalorder %s2198_s16, %s2192_s15 }
 0x88e   : > { %p2194_p12 = pnand %p2193_p11, %p2375_p5  ;;  %p2201_p2 = por %p2200_p1, %p2199_p0 }
 0x890   : > { %p2195_p13 = pneg %p2194_p12 }
 0x892   : > { %p2202_p3 = pnand %p2201_p2, %p2195_p13 }
 0x907   : > { %v1385_v7 = vpop.xlane.xlu1 %1384 }
 0x908   : > { %v1386_v8 = vsub.f32 %v1382_v5, %v1385_v7  ;;  %v1713_v5 = vld [vmem:[%s2818_s11 + $0x98] sm:$0xff] }
 0x909   : > { %v2091_v7 = vpack.c.bf16 %v1713_v5, %v1712_v4 }
 0x90a   : > { %v1387_v9 = vmul.f32 1.442695, %v1386_v8  ;;  %v1696_v8 = vld [vmem:[%s2818_s11 + $0x10] sm:$0xff] }
 0x90b   : > { %v1395_v10 = vpop.permute.xlu1 %1394 }
 0x90c   : > { %2182 = vpow2.f32 %v1387_v9  ;;  %2032 = vmatpush3.msra.mxu0 %v1395_v10  ;;  %v1697_v9 = vld [vmem:[%s2818_s11 + $0x18] sm:$0xff]  ;;  %v1714_v10 = vld [vmem:[%s2818_s11 + $0xa0] sm:$0xff] }
 0x916   : > { %v2183_v11 = vpop.eup %2182 }
 0x917   : > { %v1389_v12 = vsel %vm663_vm4, %v2183_v11, 0.0 }
 0x918   : > { %1390 = vadd.xlane.f32.xlu0 %v1389_v12  ;;  %v2093_v12 = vpack.c.bf16 %v1697_v9, %v1696_v8 }
 0x945   : > { %v1298_v53 = vpop.f32.mrb[10].mxu0 }
 0x946   : > { %v1302_v15 = vadd.f32 %v1298_v53, %v1059_v50  ;;  %v2025_v16 = vpop.f32.mrb[11].mxu0  ;;  %v1593_v50 = vld [vmem:[%s2816_s9 + $0x58] sm:$0xff]  ;;  %v2097_v53 = vpack.c.bf16 %v1699_v14, %v1698_v13 }
 0x947   : > { %v2079_v51 = vpack.c.bf16 %v1593_v50, %v1591_v48  ;;  %v1706_v48 = vld [vmem:[%s2818_s11 + $0x60] sm:$0xff]  ;;  %v1707_v50 = vld [vmem:[%s2818_s11 + $0x68] sm:$0xff] }
 0x9a5   : > { %v1391_v17 = vpop.xlane.xlu0 %1390 }
 0x9a6   : > { %2184 = vrcp.f32 %v1391_v17 }
 0x9b0   : > { %v2185_v18 = vpop.eup %2184 }
 0x9b1   : > { %v1393_v19 = vmul.f32 %v2185_v18, %v2183_v11  ;;  %v1715_v11 = vld [vmem:[%s2818_s11 + $0xa8] sm:$0xff] }
 0x9b2   : > { %v2095_v55 = vpack.c.bf16 %v1715_v11, %v1714_v10 }
 0x9b3   : > { %2034 = vmatmul.mubr.msk.f32.vlgmr.msra.gmra.mrb[12].mxu0 %vm663_vm4, %v1393_v19  ;;  %v1904_v19 = vld [vmem:[%s2814_s7] ss:$0 sm:$0xff] }
 0x9b4   : > { %1677 = vmatprep.mubr.f32.mxu0 %v2256_v20 }
 0xa86   : > { %v1466_v21 = vpop.f32.mrb[12].mxu0 }
 0xa87   : > { %v2035_v22 = vpop.f32.mrb[13].mxu0  ;;  %2041 = vmatmul.mubr.msk.f32.vlgmr.msra.gmra.mrb[10].mxu1 %vm586_vm2, %v1466_v21 }
 0xa88   : > { %2090 = vmatpush3.bf16.msra.mxu1 %v2089_v6  ;;  %v1905_v22 = vld [vmem:[%s2815_s8] ss:$0 sm:$0xff] }
 0xa89   : > { %2092 = vmatprep.subr.bf16.mxu1 %v2091_v7 }
 0xa8c   : > { %2094 = vmatpush3.bf16.msra.mxu1 %v2093_v12 }
 0xa8d   : > { %2096 = vmatprep.subr.bf16.mxu1 %v2095_v55 }
 0xa90   : > { %2098 = vmatpush3.bf16.msra.mxu1 %v2097_v53 }
 0xb5a   : > { %v1539_v23 = vpop.f32.mrb[10].mxu1 }
 0xb5b   : > { %v1543_v24 = vadd.f32 %v1539_v23, %v1302_v15  ;;  %v2042_v25 = vpop.f32.mrb[11].mxu1 }
 0xb5c   : > { %v1716_v25 = vld [vmem:[%s2818_s11 + $0xb0] sm:$0xff] }
 0xb5d   : > { %v1544_v27 = vadd.f32 %v1543_v24, %v2390_v0  ;;  %v1583_v0 = vld [vmem:[%s2816_s9 + $0x8] sm:$0xff] }
 0xb5e   : > { %v2071_v35 = vpack.c.bf16 %v1585_v34, %v1583_v0  ;;  %v1702_v0 = vld [vmem:[%s2818_s11 + $0x40] sm:$0xff]  ;;  %v1703_v34 = vld [vmem:[%s2818_s11 + $0x48] sm:$0xff] }
 0xb5f   : > { %v2586_v28 = vadd.f32 %v1903_v26, %v1544_v27  ;;  %v1717_v26 = vld [vmem:[%s2818_s11 + $0xb8] sm:$0xff] }
 0xb60   : > { %2072 = vmatprep.subr.bf16.mxu0 %v2071_v35  ;;  %v2099_v27 = vpack.c.bf16 %v1717_v26, %v1716_v25  ;;  %v2105_v35 = vpack.c.bf16 %v1703_v34, %v1702_v0 }
 0xb61   : > { %v1553_v29 = vsel %vm437_vm0, %v2586_v28, 0.0  ;;  %2074 = vmatpush1.bf16.msra.mxu0 %v2073_v38  ;;  %v2107_v38 = vpack.c.bf16 %v1721_v37, %v1720_v36 }
 0xb62   : > { %1554 = vadd.xlane.f32.xlu0 %v1553_v29  ;;  %2076 = vmatprep.subr.bf16.mxu0 %v2075_v41  ;;  %v1700_v29 = vld [vmem:[%s2818_s11 + $0x30] sm:$0xff]  ;;  %v2109_v41 = vpack.c.bf16 %v1705_v40, %v1704_v39 }
 0xb63   : > { %2100 = vmatprep.subr.bf16.mxu1 %v2099_v27 }
 0xb65   : > { %2078 = vmatpush1.bf16.msra.mxu0 %v2077_v46  ;;  %v2111_v46 = vpack.c.bf16 %v1723_v45, %v1722_v44 }
 0xb66   : > { %2080 = vmatprep.subr.bf16.mxu0 %v2079_v51  ;;  %v2113_v51 = vpack.c.bf16 %v1707_v50, %v1706_v48 }
 0xb69   : > { %2082 = vmatpush1.bf16.msra.mxu0 %v2081_v56  ;;  %v2115_v56 = vpack.c.bf16 %v1725_v54, %v1724_v52 }
 0xb6a   : > { %2084 = vmatprep.subr.bf16.mxu0 %v2083_v59  ;;  %v2117_v59 = vpack.c.bf16 %v1709_v58, %v1708_v57 }
 0xb6d   : > { %2086 = vmatpush1.bf16.msra.mxu0 %v2085_v62  ;;  %v1607_v62 = vrot.slane %v1598_v60, %v492_v49  ;;  %v1907_v49 = vld [vmem:[%s2819_s12] ss:$0 sm:$0xff] }
 0xbef   : > { %v1555_v20 = vpop.xlane.xlu0 %1554 }
 0xbf0   : > { %v1556_v30 = vmul.f32 0.015625, %v1555_v20  ;;  %v1701_v20 = vld [vmem:[%s2818_s11 + $0x38] sm:$0xff] }
 0xbf2   : > { %v2591_v31 = vsub.f32 %v2586_v28, %v1556_v30  ;;  %v2101_v30 = vpack.c.bf16 %v1701_v20, %v1700_v29 }
 0xbf4   : > { %v1558_v32 = vmul.f32 %v2591_v31, %v2591_v31  ;;  %2102 = vmatpush3.bf16.msra.mxu1 %v2101_v30 }
 0xbf6   : > { %v1559_v33 = vsel %vm437_vm0, %v1558_v32, 0.0  ;;  %v1719_v32 = vld [vmem:[%s2818_s11 + $0xc8] sm:$0xff] }
 0xbf7   : > { %1560 = vadd.xlane.f32.xlu1 %v1559_v33 }
 0xc84   : > { %v1561_v15 = vpop.xlane.xlu1 %1560 }
 0xc85   : > { %v1562_v16 = vmul.f32 0.015625, %v1561_v15 }
 0xc87   : > { %v1563_v17 = vadd.f32 1e-05, %v1562_v16 }
 0xc89   : > { %2186 = vrsqrt.f32 %v1563_v17 }
 0xc93   : > { %v2187_v18 = vpop.eup %2186 }
 0xc94   : > { %v1565_v21 = vmul.f32 %v2187_v18, %v2591_v31  ;;  %v1718_v31 = vld [vmem:[%s2818_s11 + $0xc0] sm:$0xff] }
 0xc95   : > { %v2103_v33 = vpack.c.bf16 %v1719_v32, %v1718_v31 }
 0xc96   : > { %v1573_v23 = vmul.f32 %v1904_v19, %v1565_v21 }
 0xc97   : > { %2104 = vmatprep.subr.bf16.mxu1 %v2103_v33 }
 0xc98   : > { %v1581_v24 = vadd.f32 %v1905_v22, %v1573_v23  ;;  %2106 = vmatpush3.bf16.msra.mxu1 %v2105_v35 }
 0xc99   : > { %2108 = vmatprep.subr.bf16.mxu1 %v2107_v38 }
 0xc9a   : > { %1906 = vmatmul.mubr.msk.f32.vlgmr.msra.gmra.mrb[14].mxu0 %vm437_vm0, %v1581_v24 }
 0xc9c   : > { %2110 = vmatpush3.bf16.msra.mxu1 %v2109_v41 }
 0xc9d   : > { %2112 = vmatprep.subr.bf16.mxu1 %v2111_v46 }
 0xca0   : > { %2114 = vmatpush3.bf16.msra.mxu1 %v2113_v51 }
 0xca1   : > { %2116 = vmatprep.subr.bf16.mxu1 %v2115_v56 }
 0xca4   : > { %2118 = vmatpush3.bf16.msra.mxu1 %v2117_v59 }
 0xd6d   : > { %v1679_v47 = vpop.f32.mrb[14].mxu0 }
 0xd6e   : > { %v1680_v63 = vadd.f32 %v1679_v47, %v1603_v61  ;;  %v1681_v1 = vpop.f32.mrb[15].mxu0 }
 0xd6f   : > { %v1682_v2 = vadd.f32 %v1681_v1, %v1607_v62 }
 0xd70   : > { %v1686_v3 = vmul.f32 0.70710677, %v1680_v63  ;;  %v1684_v10 = vmul.f32 0.5, %v1680_v63 }
 0xd71   : > { %v1687_v4 = vmul.f32 0.70710677, %v1682_v2  ;;  %v1685_v8 = vmul.f32 0.5, %v1682_v2 }
 0xd72   : > { %2188 = verf.f32 %v1686_v3 }
 0xd73   : > { %2190 = verf.f32 %v1687_v4 }
 0xd7c   : > { %v2189_v5 = vpop.eup %2188 }
 0xd7d   : > { %v2191_v6 = vpop.eup %2190  ;;  %v1690_v7 = vadd.f32 1.0, %v2189_v5 }
 0xd7e   : > { %v1691_v9 = vadd.f32 1.0, %v2191_v6 }
 0xd7f   : > { %v1692_v11 = vmul.f32 %v1690_v7, %v1684_v10 }
 0xd80   : > { %v1693_v43 = vmul.f32 %v1691_v9, %v1685_v8 }
 0xd82   : > { %1797 = vmatprep.mubr.f32.mxu1 %v1693_v43 }
 0xd83   : > { %1798 = vmatmul.mubr.f32.vlgmr.msra.gmra.mrb[12].mxu1 %v1692_v11 }
 0xe56   : > { %v1972_v42 = vpop.f32.mrb[12].mxu1 }
 0xe57   : > { %v1973_v12 = vpop.f32.mrb[13].mxu1 }
 0xe58   : > { %v1974_v55 = vadd.f32 %v1973_v12, %v1972_v42 }
 0xe5a   : > { %v1800_v13 = vadd.f32 %v1974_v55, %v1907_v49 }
 0xe5c   : > { %v1803_v14 = vadd.f32 %v1800_v13, %v2586_v28 }
 0xe5e   : > { %1804 = vst.msk [vmem:[%s431_s1] sm:$0xff] %vm437_vm0, %v1803_v14 }
 0xe5f   : > { %2205 = shalt.err (!%p2202_p3)
}
 0xe60   : > { %s2206_s17 = scalar_lea.hbm %s2764_s24, 128  ;;  %s2210_s22 = scalar_lea.hbm %s2820_s13, 256 }
 0xe61   : > { %p2207_p4 = scmp.ne.s32.totalorder %s2764_s24, %s2206_s17  ;;  %p2211_p9 = scmp.lt.u32.totalorder %s2764_s24, %s2820_s13 }
 0xe62   : > { %p2212_p10 = scmp.lt.u32.totalorder %s2210_s22, %s2206_s17  ;;  %p2214_p12 = scmp.lt.u32.totalorder %s2206_s17, %s2764_s24 }
 0xe63   : > { %p2208_p7 = pnand %p2207_p4, %p2375_p5 }
 0xe64   : > { %p2213_p11 = por %p2212_p10, %p2211_p9 }
 0xe65   : > { %p2209_p8 = pneg %p2208_p7 }
 0xe66   : > { %p2215_p13 = por %p2214_p12, %p2213_p11 }
 0xe68   : > { %p2216_p0 = pnand %p2215_p13, %p2209_p8 }
 0xe6a   : > { %2219 = shalt.err (!%p2216_p0)
}
 0xe6b   : > { %2119 = dma.vmem_to_hbm [thread:$0]  (%p2375_p5), %s2766_s21, 128, %s2764_s24, %s1806_s0  }
 0xe6c PF: > { %p2125_p1 = scmp.ge.s32.totalorder %s2254_s28, 2  ;;  %s1831_s15 = sand.u32 1, %s2242_s25  }
 0xe6d   : > { %s1832_s30 = scalar_lea.sflag [#allocation3], %s1831_s15 }
 0xe6e   : > { %p2122_p2 = pnand %p2125_p1, %p2379_p6 }
 0xe70   : > { %2237 = dma.done.wait (!%p2122_p2), %s1832_s30, 128  }
 0xe71   : > { %2239 = vsyncadd (!%p2122_p2), %s1832_s30, 4294967168  ;;  %s2828_s16 = sld [smem:[#allocation5_spill]]  ;;  %p23_p3 = scmp.ge.s32.totalorder %s2362_s14, 4  }
 0xe72   : > { %s2829_s25 = smov %s2246_s26  ;;  %s2830_s26 = smov %s2250_s27 }
 0xe73   : > { %s2832_s28 = smov %s2362_s14  ;;  %25 = sbr.rel (!%p23_p3) target bundleno = 6 (0x6), region = 107 }
 0xe77   : > { %s2831_s27 = smov %s2828_s16 }
 0xe7a   :  { %1837 = vsyncpa [#allocation3], 1 }
 0xe7b   :  { %1839 = vsyncpa [#allocation3 + $0x1], 1 }

</bundles_post_ra>
